<compile_context>
chip_gen: v5e
topology: v5e:2x2
jax: 0.10.0
libtpu: 0.0.40
codegen_flags: <defaults>
</compile_context>

<pallas_src>
import jax
import jax.numpy as jnp
from jax.experimental import pallas as pl
from jax.experimental.pallas import tpu as pltpu


def _scale_shift_kernel(x_ref, s_ref, b_ref, o_ref):
    # y = x * scale + bias   (scale/bias are [1, D_f] f32, broadcast over rows)
    x = x_ref[...].astype(jnp.float32)
    o_ref[...] = (x * s_ref[...] + b_ref[...]).astype(o_ref.dtype)


def standard_scaler_forward(x, scale, bias, *, block_rows=2048):
    """Apply the fitted StandardScaler: y = x * scale + bias.

    x:     [..., D] float array (leading dims flattened, like nn.Linear)
    scale: [D]      (= 1/std, the diagonal of the fitted linear weight)
    bias:  [D]      (= -mean/std)
    block_rows: max folded-row tile (one folded row = 128 lanes).
    """
    orig_shape = x.shape
    D = orig_shape[-1]
    dtype = x.dtype

    x2 = x.reshape(-1, D)
    N = x2.shape[0]

    # Fold rows into the lane axis so the kernel's last dim is 128-lane dense.
    fold = (128 // D) if (D < 128 and 128 % D == 0) else 1
    D_f = D * fold

    # Folded row count; pad so the row tile divides it and the sublane dim of
    # each block is a multiple of 8.
    rows = pl.cdiv(N, fold)
    tn = min(block_rows, rows)
    tn = max(8, ((tn + 7) // 8) * 8)
    rows_padded = pl.cdiv(rows, tn) * tn

    pad = rows_padded * fold - N
    if pad:
        x2 = jnp.pad(x2, ((0, pad), (0, 0)))
    xf = x2.reshape(rows_padded, D_f)                                 # [rows_padded, 128]

    # Row-major fold: folded[r, k*D + d] = x[r*fold + k, d] -> tile vectors k times.
    scale_f = jnp.tile(scale.reshape(1, D).astype(jnp.float32), (1, fold))   # [1, D_f]
    bias_f = jnp.tile(bias.reshape(1, D).astype(jnp.float32), (1, fold))     # [1, D_f]

    grid = (rows_padded // tn,)
    itemsize = jnp.dtype(dtype).itemsize

    yf = pl.pallas_call(
        _scale_shift_kernel,
        out_shape=jax.ShapeDtypeStruct((rows_padded, D_f), dtype),
        grid_spec=pl.GridSpec(
            grid=grid,
            in_specs=[
                pl.BlockSpec((tn, D_f), lambda i: (i, 0)),    # x tile, streamed
                pl.BlockSpec((1, D_f), lambda i: (0, 0)),     # scale, fetched once
                pl.BlockSpec((1, D_f), lambda i: (0, 0)),     # bias, fetched once
            ],
            out_specs=pl.BlockSpec((tn, D_f), lambda i: (i, 0)),
        ),
        compiler_params=pltpu.CompilerParams(
            dimension_semantics=("parallel",),                # independent row tiles
        ),
        cost_estimate=pl.CostEstimate(
            flops=2 * rows_padded * D_f,
            transcendentals=0,
            bytes_accessed=2 * rows_padded * D_f * itemsize + 2 * D_f * 4,
        ),
    )(xf, scale_f, bias_f)

    y = yf.reshape(rows_padded * fold, D)[:N]
    return y.reshape(orig_shape)


def fit_params(x_fit):
    """Mimic StandardScaler.fit: scale = 1/std, bias = -mean/std (unbiased=False).

    Plain-JAX parameter setup, matching torch.std_mean(dim=0, unbiased=False).
    Note: like the PyTorch reference, a zero-variance column yields inf/NaN; add
    jnp.maximum(std, eps) if real data may contain constant features.
    """
    avg = jnp.mean(x_fit, axis=0)
    std = jnp.std(x_fit, axis=0)        # population std (ddof=0) == unbiased=False
    scale = 1.0 / std                   # diagonal of the fitted linear weight
    bias = -avg / std
    return scale.astype(jnp.float32), bias.astype(jnp.float32)


if __name__ == "__main__":
    key = jax.random.PRNGKey(0)
    k_fit, k_x, k_x2 = jax.random.split(key, 3)

    N, D = 16, 32                       # batch=16, state_dim=32

    # Data used to "fit" the scaler (deterministic, in-script).
    x_fit = jax.random.normal(k_fit, (64, D), dtype=jnp.float32) * 3.0 + 1.5
    scale, bias = fit_params(x_fit)

    # Reference formulation identical to the PyTorch module (W = diag(scale)).
    weight = jnp.diag(scale)

    # Main forward run.
    x = jax.random.normal(k_x, (N, D), dtype=jnp.float32) * 3.0 + 1.5
    y = jax.block_until_ready(standard_scaler_forward(x, scale, bias))
    y_ref = x @ weight.T + bias
    assert jnp.allclose(y, y_ref, atol=1e-5, rtol=1e-5), "mismatch vs reference"

    # Ragged batch (exercises fold/tile padding path).
    x_odd = jax.random.normal(k_x2, (13, D), dtype=jnp.float32) * 2.0 - 0.7
    y_odd = jax.block_until_ready(standard_scaler_forward(x_odd, scale, bias))
    y_odd_ref = x_odd @ weight.T + bias
    assert jnp.allclose(y_odd, y_odd_ref, atol=1e-5, rtol=1e-5), "mismatch (ragged)"

    print("KERNEL_OK")
</pallas_src>

<mosaic_0001>
module attributes {stable_mosaic.version = 11 : i64} {
  func.func @_scale_shift_kernel(%arg0: i32, %arg1: memref<8x128xf32, #tpu.memory_space<vmem>>, %arg2: memref<1x128xf32, #tpu.memory_space<vmem>>, %arg3: memref<1x128xf32, #tpu.memory_space<vmem>>, %arg4: memref<8x128xf32, #tpu.memory_space<vmem>>) attributes {dimension_semantics = [#tpu.dimension_semantics<parallel>], iteration_bounds = array<i64: 1>, scalar_prefetch = 0 : i64, scratch_operands = 0 : i64, tpu.core_type = #tpu.core_type<tc>, window_params = [{transform_indices = @transform_0, window_bounds = array<i64: 8, 128>}, {pipeline_mode = #tpu.pipeline_mode<synchronous>, transform_indices = @transform_1, window_bounds = array<i64: 1, 128>}, {pipeline_mode = #tpu.pipeline_mode<synchronous>, transform_indices = @transform_2, window_bounds = array<i64: 1, 128>}, {transform_indices = @transform_3, window_bounds = array<i64: 8, 128>}]} {
    %c0 = arith.constant 0 : index
    %c0_0 = arith.constant 0 : index
    %0 = vector.load %arg1[%c0, %c0_0] : memref<8x128xf32, #tpu.memory_space<vmem>>, vector<8x128xf32>
    %c0_1 = arith.constant 0 : index
    %c0_2 = arith.constant 0 : index
    %1 = vector.load %arg2[%c0_1, %c0_2] : memref<1x128xf32, #tpu.memory_space<vmem>>, vector<1x128xf32>
    %2 = vector.broadcast %1 : vector<1x128xf32> to vector<8x128xf32>
    %3 = arith.mulf %0, %2 : vector<8x128xf32>
    %c0_3 = arith.constant 0 : index
    %c0_4 = arith.constant 0 : index
    %4 = vector.load %arg3[%c0_3, %c0_4] : memref<1x128xf32, #tpu.memory_space<vmem>>, vector<1x128xf32>
    %5 = vector.broadcast %4 : vector<1x128xf32> to vector<8x128xf32>
    %6 = arith.addf %3, %5 : vector<8x128xf32>
    %c0_5 = arith.constant 0 : index
    %c0_6 = arith.constant 0 : index
    %7 = vector.load %arg4[%c0_5, %c0_6] : memref<8x128xf32, #tpu.memory_space<vmem>>, vector<8x128xf32>
    tpu.vector_store %arg4[%c0_5, %c0_6], %6 {strides = array<i32>} : memref<8x128xf32, #tpu.memory_space<vmem>>, vector<8x128xf32>,
    return
  }
  func.func @transform_0(%arg0: i32) -> (i32, i32) {
    %c0_i32 = arith.constant 0 : i32
    %c0_i32_0 = arith.constant 0 : i32
    return %arg0, %c0_i32 : i32, i32
  }
  func.func @transform_1(%arg0: i32) -> (i32, i32) {
    %c0_i32 = arith.constant 0 : i32
    %c0_i32_0 = arith.constant 0 : i32
    %c0_i32_1 = arith.constant 0 : i32
    return %c0_i32, %c0_i32_0 : i32, i32
  }
  func.func @transform_2(%arg0: i32) -> (i32, i32) {
    %c0_i32 = arith.constant 0 : i32
    %c0_i32_0 = arith.constant 0 : i32
    %c0_i32_1 = arith.constant 0 : i32
    return %c0_i32, %c0_i32_0 : i32, i32
  }
  func.func @transform_3(%arg0: i32) -> (i32, i32) {
    %c0_i32 = arith.constant 0 : i32
    %c0_i32_0 = arith.constant 0 : i32
    return %arg0, %c0_i32 : i32, i32
  }
}

</mosaic_0001>

<bundles_post_ra>
// kernel: tpu_custom_call.1
= control target key start
LH: loop header
LB: loop body
LE: loop exit
PB: predicated region body
PF: predicated region fallthrough
CT: control target
= control target key end

     0   :  { %8 = vsyncpa [#allocation3], 0  ;;  %s191_s0 = inlined_call_operand.hbm [shape: f32[8,128], index: 0, kind: input, shape index: {}]   ;;  %s192_s1 = inlined_call_operand.hbm [shape: f32[1,128], index: 1, kind: input, shape index: {}]   ;;  %s193_s2 = inlined_call_operand.vmem [shape: f32[1,128], index: 2, kind: input, shape index: {}]   ;;  %s194_s3 = inlined_call_operand.hbm [shape: f32[8,128], index: 3, kind: output, shape index: {}]  }
   0x1   :  { %9 = vsyncpa [#allocation6], 0 }
   0x2   :  { %10 = vsyncpa [#allocation4], 0  ;;  %s16_s14 = sshll.u32 %s191_s0, 4  ;;  %s156_s15 = smov [#allocation2]   ;;  %s17_s14 = int_to_ptr.hbm [resolvable:$true] %s16_s14 }
   0x3   :  { %s18_s16 = sshll.u32 %s156_s15, 4  ;;  %s27_s19 = sshll.u32 %s192_s1, 4  ;;  %s19_s16 = int_to_ptr.vmem [resolvable:$true] %s18_s16  ;;  %s28_s19 = int_to_ptr.hbm [resolvable:$true] %s27_s19 }
   0x4   :  { %21 = dma.hbm_to_vmem [thread:$0]  %s17_s14, 128, %s19_s16, [#allocation3]  }
   0x5   :  { %s157_s20 = smov [#allocation5]  }
   0x6   :  { %s29_s21 = sshll.u32 %s157_s20, 4  ;;  %s30_s21 = int_to_ptr.vmem [resolvable:$true] %s29_s21 }
   0x7   :  { %32 = dma.hbm_to_vmem [thread:$0]  %s28_s19, 16, %s30_s21, [#allocation6]  }
   0x8   :  { %150 = dma.done.wait [#allocation3], 128  }
   0x9   :  { %151 = vsyncadd [#allocation3], 4294967168 }
   0xa   :  { %152 = dma.done.wait [#allocation6], 16  }
   0xb   :  { %153 = vsyncadd [#allocation6], 4294967280  ;;  %v43_v0 = vld [vmem:[#allocation2] sm:$0xff]  ;;  %v76_v1 = vld [vmem:[#allocation5] ss:$0 sm:$0xff]  ;;  %s158_s23 = smov [#allocation7]  }
   0xc   :  { %v77_v2 = vld [vmem:[%s193_s2] ss:$0 sm:$0xff]  ;;  %s60_s24 = sshll.u32 %s158_s23, 4  ;;  %s62_s26 = sshll.u32 %s194_s3, 4  ;;  %v48_v3 = vmul.f32 %v76_v1, %v43_v0  ;;  %s61_s24 = int_to_ptr.vmem [resolvable:$true] %s60_s24  ;;  %s63_s26 = int_to_ptr.hbm [resolvable:$true] %s62_s26 }
   0xe   :  { %v53_v4 = vadd.f32 %v77_v2, %v48_v3 }
  0x10   :  { %54 = vst [vmem:[#allocation7] sm:$0xff] %v53_v4 }
  0x11   :  { %65 = dma.vmem_to_hbm [thread:$0]  %s61_s24, 128, %s63_s26, [#allocation4]  }
  0x12   :  { %154 = dma.done.wait [#allocation4], 128  }
  0x13   :  { %155 = vsyncadd [#allocation4], 4294967168 }
  0x14   :  { %70 = vsyncpa [#allocation3], 1 }
  0x15   :  { %71 = vsyncpa [#allocation6], 1 }
  0x16   :  { %72 = vsyncpa [#allocation4], 1 }

</bundles_post_ra>
